<compile_context>
chip_gen: v7x
topology: tpu7x:2x2x1
jax: 0.10.0
libtpu: 0.0.40
codegen_flags: <defaults>
</compile_context>

<pallas_src>
import jax
import jax.numpy as jnp
from jax.experimental import pallas as pl
from jax.experimental.pallas import tpu as pltpu

_NEG = -1.0e12  # matches torch.tensor(-1000000000000.0)


def _round_up(x, m):
    return ((x + m - 1) // m) * m


def _choose_b_tile(batch, bytes_per_elem):
    """Pick the batch tile (lane axis) that amortizes per-grid-step overhead.

    Single tile for small batches; otherwise split into >=2 tiles so both v7x
    TensorCores get work via the 'parallel' batch axis, and cap the tile so
    the double-buffered per-step streams stay well under the ~32 MiB scoped
    VMEM default (v7x physical VMEM is only 64 MiB).
    """
    b_pad = _round_up(max(int(batch), 1), 128)
    vmem_budget = 24 * 1024 * 1024
    max_tile = max(128, (vmem_budget // (2 * max(int(bytes_per_elem), 1))) // 128 * 128)
    if b_pad <= 4096:
        return min(b_pad, max_tile)
    half = _round_up((b_pad + 1) // 2, 128)
    return min(half, 16384, max_tile)


def _make_actor_kernel(use_constraint):
    """Fused MLP + temperature + (optional) constraint + log_softmax kernel.

    Everything is laid out [features, batch_tile] so the batch tile (multiple
    of 128) is the lane axis: all loads/stores are full-lane and unmasked even
    though num_actions is tiny.
    """

    def kernel(*refs):
        if use_constraint:
            (obs_ref, mask_ref, avail_ref,
             w1a_ref, w1b_ref, b1_ref, w2_ref, b2_ref, w3_ref, b3_ref,
             logp_ref) = refs
        else:
            (obs_ref, mask_ref,
             w1a_ref, w1b_ref, b1_ref, w2_ref, b2_ref, w3_ref, b3_ref,
             logp_ref) = refs

        # Layer 1 (+ fused channel-concat): torch's cat([observed, mask], 1)
        # @ W1 == W1a @ observed + W1b @ mask, so the concatenated embed is
        # never materialized.  bf16 operands go straight into the MXU with an
        # f32 accumulator — no VPU up-cast of the big activation tile.
        h = jnp.dot(w1a_ref[...], obs_ref[...], preferred_element_type=jnp.float32)
        h = h + jnp.dot(w1b_ref[...], mask_ref[...], preferred_element_type=jnp.float32)
        h = jnp.maximum(h + b1_ref[...], 0.0)

        # Layer 2 + ReLU (tiny, f32).
        h = jnp.dot(w2_ref[...], h, preferred_element_type=jnp.float32) + b2_ref[...]
        h = jnp.maximum(h, 0.0)

        # Output layer; 1/temperature is pre-folded into W3 / b3.  [A, Bt]
        logits = jnp.dot(w3_ref[...], h, preferred_element_type=jnp.float32) + b3_ref[...]

        if use_constraint:
            avail = avail_ref[...].astype(jnp.int32)  # int8 HBM stream, cheap VPU unpack
            logits = jnp.where(avail != 0, logits, jnp.float32(_NEG))

        # log_softmax over the action axis (axis 0 = sublanes; lanes = batch).
        m = jnp.max(logits, axis=0, keepdims=True)
        lse = m + jnp.log(jnp.sum(jnp.exp(logits - m), axis=0, keepdims=True))
        logp_ref[...] = (logits - lse).astype(logp_ref.dtype)

    return kernel


def conp_obs_actor_forward(observed, mask, availability, params, *,
                           temperature=1.0, logit_constraint=True,
                           b_tile=None, io_dtype=jnp.bfloat16,
                           out_dtype=jnp.float32,
                           inputs_feature_major=False,
                           batch_major_output=False):
    """Returns the Categorical policy's normalized log-probs.

    inputs_feature_major=False : observed/mask [B, obs_dim], availability
        [B, A] (torch layout); casts happen before the transposes so the
        materialized feature-major copies are as small as possible.
    inputs_feature_major=True  : observed/mask [obs_dim, B], availability
        [A, B]; no wrapper transposes at all.
    batch_major_output=False   : returns [A, B] (the layout the kernel writes
        natively).  True returns torch-style [B, A].
    io_dtype=bf16 rounds `observed` (mask 0/1 values stay exact); callers that
    need exact f32 parity should pass io_dtype=jnp.float32.
    """
    if not float(temperature) > 0.0:
        raise ValueError("temperature must be > 0")

    W1, b1, W2, b2, W3, b3 = params
    obs_dim = W1.shape[0] // 2
    H1 = W1.shape[1]
    H2 = W2.shape[1]
    A = W3.shape[1]

    # ---- feature-major (lanes = batch) views of the per-element streams ----
    if inputs_feature_major:
        obs_t = observed.astype(io_dtype)                              # [obs_dim, B]
        mask_t = mask.astype(io_dtype)                                 # [obs_dim, B]
        B = obs_t.shape[1]
        avail_t = (availability != 0).astype(jnp.int8) if logit_constraint else None
    else:
        B = observed.shape[0]
        obs_t = observed.astype(io_dtype).T                            # cast BEFORE transpose
        mask_t = mask.astype(io_dtype).T
        avail_t = (availability != 0).astype(jnp.int8).T if logit_constraint else None

    io_itemsize = jnp.dtype(io_dtype).itemsize
    out_itemsize = jnp.dtype(out_dtype).itemsize
    bytes_per_elem = 2 * obs_dim * io_itemsize + A * out_itemsize + (A if logit_constraint else 0)

    if b_tile is None:
        b_tile = _choose_b_tile(B, bytes_per_elem)
    if b_tile % 128 != 0:
        raise ValueError("b_tile must be a multiple of 128 (lane width)")
    n_tiles = pl.cdiv(B, b_tile)
    b_pad = n_tiles * b_tile

    if b_pad != B:
        pad = ((0, 0), (0, b_pad - B))
        obs_t = jnp.pad(obs_t, pad)
        mask_t = jnp.pad(mask_t, pad)
        if logit_constraint:
            avail_t = jnp.pad(avail_t, pad)  # padded cols all-unavailable; sliced off below

    # ---- tiny VMEM-resident parameters (transposed; temperature folded) ----
    inv_t = 1.0 / float(temperature)
    w1a = W1[:obs_dim].T.astype(io_dtype)              # [H1, obs_dim]  (observed half)
    w1b = W1[obs_dim:].T.astype(io_dtype)              # [H1, obs_dim]  (mask half)
    w2t = W2.T.astype(jnp.float32)                     # [H2, H1]
    w3t = (W3 * inv_t).T.astype(jnp.float32)           # [A,  H2]
    b1t = b1.reshape(H1, 1).astype(jnp.float32)
    b2t = b2.reshape(H2, 1).astype(jnp.float32)
    b3t = (b3 * inv_t).reshape(A, 1).astype(jnp.float32)

    def stream_spec(rows):
        return pl.BlockSpec((rows, b_tile), lambda i: (0, i))

    def const_spec(shape):
        return pl.BlockSpec(shape, lambda i: (0, 0))   # VMEM-resident across grid steps

    inputs = [obs_t, mask_t]
    in_specs = [stream_spec(obs_dim), stream_spec(obs_dim)]
    if logit_constraint:
        inputs.append(avail_t)
        in_specs.append(stream_spec(A))
    inputs += [w1a, w1b, b1t, w2t, b2t, w3t, b3t]
    in_specs += [const_spec(w1a.shape), const_spec(w1b.shape), const_spec(b1t.shape),
                 const_spec(w2t.shape), const_spec(b2t.shape),
                 const_spec(w3t.shape), const_spec(b3t.shape)]

    w_bytes = ((w1a.size + w1b.size) * io_itemsize
               + 4 * (w2t.size + w3t.size + H1 + H2 + A))
    cost = pl.CostEstimate(
        flops=int(2 * b_pad * (2 * obs_dim * H1 + H1 * H2 + H2 * A)),
        transcendentals=int(b_pad * (A + 1)),
        bytes_accessed=int(bytes_per_elem * b_pad + w_bytes),
    )

    logp_t = pl.pallas_call(
        _make_actor_kernel(logit_constraint),
        grid=(n_tiles,),
        in_specs=in_specs,
        out_specs=stream_spec(A),
        out_shape=jax.ShapeDtypeStruct((A, b_pad), out_dtype),
        compiler_params=pltpu.CompilerParams(
            dimension_semantics=("parallel",)),
        cost_estimate=cost,
    )(*inputs)

    if b_pad != B:
        logp_t = logp_t[:, :B]
    return logp_t.T if batch_major_output else logp_t


def _init_linear(key, fan_in, fan_out):
    """Deterministic PyTorch-style uniform(-1/sqrt(fan_in), 1/sqrt(fan_in)) init."""
    lim = 1.0 / jnp.sqrt(jnp.float32(fan_in))
    kw, kb = jax.random.split(key)
    W = jax.random.uniform(kw, (fan_in, fan_out), jnp.float32, -lim, lim)
    b = jax.random.uniform(kb, (fan_out,), jnp.float32, -lim, lim)
    return W, b


if __name__ == "__main__":
    # Small shapes consistent with the module; B deliberately not a multiple of
    # 128 to exercise batch padding.
    B = 200
    obs_dim = 16
    actor_layers = [32, 32]              # config.actor_layers
    num_actions = 8
    temperature = 0.7

    key = jax.random.PRNGKey(0)
    k_obs, k_mask, k_avail, k_l1, k_l2, k_l3 = jax.random.split(key, 6)

    observed = jax.random.normal(k_obs, (B, obs_dim), jnp.float32)
    mask = (jax.random.uniform(k_mask, (B, obs_dim)) > 0.5).astype(jnp.float32)
    availability = (jax.random.uniform(k_avail, (B, num_actions)) > 0.3).astype(jnp.float32)
    availability = availability.at[:, 0].set(1.0)   # precondition: >=1 available action/row

    W1, b1 = _init_linear(k_l1, 2 * obs_dim, actor_layers[0])
    W2, b2 = _init_linear(k_l2, actor_layers[0], actor_layers[1])
    W3, b3 = _init_linear(k_l3, actor_layers[1], num_actions)
    params = (W1, b1, W2, b2, W3, b3)

    # ---- pure-JAX reference (MLP -> /temperature -> constraint -> log_softmax) ----
    embed = jnp.concatenate([observed, mask], axis=1)
    h = jnp.maximum(embed @ W1 + b1, 0.0)
    h = jnp.maximum(h @ W2 + b2, 0.0)
    raw_logits = (h @ W3 + b3) / temperature
    ref_logits_c = jnp.where(availability != 0.0, raw_logits, jnp.float32(_NEG))
    ref_logp_c = ref_logits_c - jax.scipy.special.logsumexp(ref_logits_c, axis=-1, keepdims=True)
    ref_logp_u = raw_logits - jax.scipy.special.logsumexp(raw_logits, axis=-1, keepdims=True)

    # 1) Exact path: f32 I/O + f32 W1, torch-style [B, A] output.
    logp = conp_obs_actor_forward(observed, mask, availability, params,
                                  temperature=temperature, logit_constraint=True,
                                  io_dtype=jnp.float32, batch_major_output=True)
    jax.block_until_ready(logp)
    assert logp.shape == (B, num_actions)
    assert jnp.allclose(logp, ref_logp_c, atol=1e-4, rtol=1e-4)

    # 2) Default fast path: bf16 embed/W1 fed straight to the MXU, int8
    #    availability, feature-major [A, B] output (no output transpose pass).
    logp_fm = conp_obs_actor_forward(observed, mask, availability, params,
                                     temperature=temperature, logit_constraint=True)
    jax.block_until_ready(logp_fm)
    assert logp_fm.shape == (num_actions, B)
    assert jnp.allclose(logp_fm.T, ref_logp_c, atol=5e-2, rtol=5e-2)

    # 3) Zero-plumbing path: producer already emits feature-major tensors, so
    #    the wrapper does no transposes at all.
    logp_zero = conp_obs_actor_forward(observed.T, mask.T, availability.T, params,
                                       temperature=temperature, logit_constraint=True,
                                       inputs_feature_major=True)
    jax.block_until_ready(logp_zero)
    assert jnp.allclose(logp_zero.T, ref_logp_c, atol=5e-2, rtol=5e-2)

    # 4) logit_constraint=False: no availability stream, no select in-kernel.
    logp_u = conp_obs_actor_forward(observed, mask, None, params,
                                    temperature=temperature, logit_constraint=False)
    jax.block_until_ready(logp_u)
    assert jnp.allclose(logp_u.T, ref_logp_u, atol=5e-2, rtol=5e-2)

    # TODO(synk): Categorical sampling (Gumbel-max over the returned log-probs)
    # is left to the caller; fusing it in-kernel would shrink the output to a
    # single int32 action per batch element.
    print("KERNEL_OK")
</pallas_src>

<mosaic_0001>
module attributes {stable_mosaic.version = 11 : i64} {
  func.func @kernel(%arg0: i32, %arg1: memref<16x256xf32, #tpu.memory_space<vmem>>, %arg2: memref<16x256xf32, #tpu.memory_space<vmem>>, %arg3: memref<8x256xi8, #tpu.memory_space<vmem>>, %arg4: memref<32x16xf32, #tpu.memory_space<vmem>>, %arg5: memref<32x16xf32, #tpu.memory_space<vmem>>, %arg6: memref<32x1xf32, #tpu.memory_space<vmem>>, %arg7: memref<32x32xf32, #tpu.memory_space<vmem>>, %arg8: memref<32x1xf32, #tpu.memory_space<vmem>>, %arg9: memref<8x32xf32, #tpu.memory_space<vmem>>, %arg10: memref<8x1xf32, #tpu.memory_space<vmem>>, %arg11: memref<8x256xf32, #tpu.memory_space<vmem>>) attributes {dimension_semantics = [#tpu.dimension_semantics<parallel>], iteration_bounds = array<i64: 1>, scalar_prefetch = 0 : i64, scratch_operands = 0 : i64, tpu.core_type = #tpu.core_type<tc>, window_params = [{transform_indices = @transform_0, window_bounds = array<i64: 16, 256>}, {transform_indices = @transform_1, window_bounds = array<i64: 16, 256>}, {transform_indices = @transform_2, window_bounds = array<i64: 8, 256>}, {pipeline_mode = #tpu.pipeline_mode<synchronous>, transform_indices = @transform_3, window_bounds = array<i64: 32, 16>}, {pipeline_mode = #tpu.pipeline_mode<synchronous>, transform_indices = @transform_4, window_bounds = array<i64: 32, 16>}, {pipeline_mode = #tpu.pipeline_mode<synchronous>, transform_indices = @transform_5, window_bounds = array<i64: 32, 1>}, {pipeline_mode = #tpu.pipeline_mode<synchronous>, transform_indices = @transform_6, window_bounds = array<i64: 32, 32>}, {pipeline_mode = #tpu.pipeline_mode<synchronous>, transform_indices = @transform_7, window_bounds = array<i64: 32, 1>}, {pipeline_mode = #tpu.pipeline_mode<synchronous>, transform_indices = @transform_8, window_bounds = array<i64: 8, 32>}, {pipeline_mode = #tpu.pipeline_mode<synchronous>, transform_indices = @transform_9, window_bounds = array<i64: 8, 1>}, {transform_indices = @transform_10, window_bounds = array<i64: 8, 256>}]} {
    %c0 = arith.constant 0 : index
    %c0_0 = arith.constant 0 : index
    %0 = vector.load %arg4[%c0, %c0_0] : memref<32x16xf32, #tpu.memory_space<vmem>>, vector<32x16xf32>
    %c0_1 = arith.constant 0 : index
    %c0_2 = arith.constant 0 : index
    %1 = vector.load %arg1[%c0_1, %c0_2] : memref<16x256xf32, #tpu.memory_space<vmem>>, vector<16x256xf32>
    %cst = arith.constant dense<0.000000e+00> : vector<32x256xf32>
    %2 = tpu.matmul %0, %1, %cst {dimension_numbers = #tpu.dot_dimension_numbers<[1], [0], [0], [1], [0, 0, 1, 1], [], []>} : vector<32x16xf32>, vector<16x256xf32>, vector<32x256xf32> -> vector<32x256xf32>
    %c0_3 = arith.constant 0 : index
    %c0_4 = arith.constant 0 : index
    %3 = vector.load %arg5[%c0_3, %c0_4] : memref<32x16xf32, #tpu.memory_space<vmem>>, vector<32x16xf32>
    %c0_5 = arith.constant 0 : index
    %c0_6 = arith.constant 0 : index
    %4 = vector.load %arg2[%c0_5, %c0_6] : memref<16x256xf32, #tpu.memory_space<vmem>>, vector<16x256xf32>
    %cst_7 = arith.constant dense<0.000000e+00> : vector<32x256xf32>
    %5 = tpu.matmul %3, %4, %cst_7 {dimension_numbers = #tpu.dot_dimension_numbers<[1], [0], [0], [1], [0, 0, 1, 1], [], []>} : vector<32x16xf32>, vector<16x256xf32>, vector<32x256xf32> -> vector<32x256xf32>
    %6 = arith.addf %2, %5 : vector<32x256xf32>
    %c0_8 = arith.constant 0 : index
    %c0_9 = arith.constant 0 : index
    %7 = vector.load %arg6[%c0_8, %c0_9] : memref<32x1xf32, #tpu.memory_space<vmem>>, vector<32x1xf32>
    %8 = vector.broadcast %7 : vector<32x1xf32> to vector<32x256xf32>
    %9 = arith.addf %6, %8 : vector<32x256xf32>
    %cst_10 = arith.constant 0.000000e+00 : f32
    %10 = vector.broadcast %cst_10 : f32 to vector<32x256xf32>
    %11 = arith.maximumf %9, %10 : vector<32x256xf32>
    %c0_11 = arith.constant 0 : index
    %c0_12 = arith.constant 0 : index
    %12 = vector.load %arg7[%c0_11, %c0_12] : memref<32x32xf32, #tpu.memory_space<vmem>>, vector<32x32xf32>
    %cst_13 = arith.constant dense<0.000000e+00> : vector<32x256xf32>
    %13 = tpu.matmul %12, %11, %cst_13 {dimension_numbers = #tpu.dot_dimension_numbers<[1], [0], [0], [1], [0, 0, 1, 1], [], []>} : vector<32x32xf32>, vector<32x256xf32>, vector<32x256xf32> -> vector<32x256xf32>
    %c0_14 = arith.constant 0 : index
    %c0_15 = arith.constant 0 : index
    %14 = vector.load %arg8[%c0_14, %c0_15] : memref<32x1xf32, #tpu.memory_space<vmem>>, vector<32x1xf32>
    %15 = vector.broadcast %14 : vector<32x1xf32> to vector<32x256xf32>
    %16 = arith.addf %13, %15 : vector<32x256xf32>
    %cst_16 = arith.constant 0.000000e+00 : f32
    %17 = vector.broadcast %cst_16 : f32 to vector<32x256xf32>
    %18 = arith.maximumf %16, %17 : vector<32x256xf32>
    %c0_17 = arith.constant 0 : index
    %c0_18 = arith.constant 0 : index
    %19 = vector.load %arg9[%c0_17, %c0_18] : memref<8x32xf32, #tpu.memory_space<vmem>>, vector<8x32xf32>
    %cst_19 = arith.constant dense<0.000000e+00> : vector<8x256xf32>
    %20 = tpu.matmul %19, %18, %cst_19 {dimension_numbers = #tpu.dot_dimension_numbers<[1], [0], [0], [1], [0, 0, 1, 1], [], []>} : vector<8x32xf32>, vector<32x256xf32>, vector<8x256xf32> -> vector<8x256xf32>
    %c0_20 = arith.constant 0 : index
    %c0_21 = arith.constant 0 : index
    %21 = vector.load %arg10[%c0_20, %c0_21] : memref<8x1xf32, #tpu.memory_space<vmem>>, vector<8x1xf32>
    %22 = vector.broadcast %21 : vector<8x1xf32> to vector<8x256xf32>
    %23 = arith.addf %20, %22 : vector<8x256xf32>
    %c0_22 = arith.constant 0 : index
    %c0_23 = arith.constant 0 : index
    %24 = vector.load %arg3[%c0_22, %c0_23] : memref<8x256xi8, #tpu.memory_space<vmem>>, vector<8x256xi8>
    %25 = arith.extsi %24 : vector<8x256xi8> to vector<8x256xi32>
    %c0_i32 = arith.constant 0 : i32
    %26 = vector.broadcast %c0_i32 : i32 to vector<8x256xi32>
    %27 = arith.cmpi ne, %25, %26 : vector<8x256xi32>
    %cst_24 = arith.constant -9.99999995E+11 : f32
    %28 = vector.broadcast %cst_24 : f32 to vector<8x256xf32>
    %29 = arith.select %27, %23, %28 : vector<8x256xi1>, vector<8x256xf32>
    %cst_25 = arith.constant dense<0xFF800000> : vector<256xf32>
    %30 = vector.multi_reduction <maximumf>, %29, %cst_25 [0] : vector<8x256xf32> to vector<256xf32>
    %31 = vector.shape_cast %30 : vector<256xf32> to vector<1x256xf32>
    %32 = vector.broadcast %31 : vector<1x256xf32> to vector<8x256xf32>
    %33 = arith.subf %29, %32 : vector<8x256xf32>
    %34 = math.exp %33 : vector<8x256xf32>
    %cst_26 = arith.constant dense<0.000000e+00> : vector<256xf32>
    %35 = vector.multi_reduction <add>, %34, %cst_26 [0] : vector<8x256xf32> to vector<256xf32>
    %36 = vector.shape_cast %35 : vector<256xf32> to vector<1x256xf32>
    %37 = math.log %36 : vector<1x256xf32>
    %38 = arith.addf %31, %37 : vector<1x256xf32>
    %39 = vector.broadcast %38 : vector<1x256xf32> to vector<8x256xf32>
    %40 = arith.subf %29, %39 : vector<8x256xf32>
    %c0_27 = arith.constant 0 : index
    %c0_28 = arith.constant 0 : index
    %41 = vector.load %arg11[%c0_27, %c0_28] : memref<8x256xf32, #tpu.memory_space<vmem>>, vector<8x256xf32>
    tpu.vector_store %arg11[%c0_27, %c0_28], %40 {strides = array<i32>} : memref<8x256xf32, #tpu.memory_space<vmem>>, vector<8x256xf32>,
    return
  }
  func.func @transform_0(%arg0: i32) -> (i32, i32) {
    %c0_i32 = arith.constant 0 : i32
    %c0_i32_0 = arith.constant 0 : i32
    return %c0_i32, %arg0 : i32, i32
  }
  func.func @transform_1(%arg0: i32) -> (i32, i32) {
    %c0_i32 = arith.constant 0 : i32
    %c0_i32_0 = arith.constant 0 : i32
    return %c0_i32, %arg0 : i32, i32
  }
  func.func @transform_2(%arg0: i32) -> (i32, i32) {
    %c0_i32 = arith.constant 0 : i32
    %c0_i32_0 = arith.constant 0 : i32
    return %c0_i32, %arg0 : i32, i32
  }
  func.func @transform_3(%arg0: i32) -> (i32, i32) {
    %c0_i32 = arith.constant 0 : i32
    %c0_i32_0 = arith.constant 0 : i32
    %c0_i32_1 = arith.constant 0 : i32
    return %c0_i32, %c0_i32_0 : i32, i32
  }
  func.func @transform_4(%arg0: i32) -> (i32, i32) {
    %c0_i32 = arith.constant 0 : i32
    %c0_i32_0 = arith.constant 0 : i32
    %c0_i32_1 = arith.constant 0 : i32
    return %c0_i32, %c0_i32_0 : i32, i32
  }
  func.func @transform_5(%arg0: i32) -> (i32, i32) {
    %c0_i32 = arith.constant 0 : i32
    %c0_i32_0 = arith.constant 0 : i32
    %c0_i32_1 = arith.constant 0 : i32
    return %c0_i32, %c0_i32_0 : i32, i32
  }
  func.func @transform_6(%arg0: i32) -> (i32, i32) {
    %c0_i32 = arith.constant 0 : i32
    %c0_i32_0 = arith.constant 0 : i32
    %c0_i32_1 = arith.constant 0 : i32
    return %c0_i32, %c0_i32_0 : i32, i32
  }
  func.func @transform_7(%arg0: i32) -> (i32, i32) {
    %c0_i32 = arith.constant 0 : i32
    %c0_i32_0 = arith.constant 0 : i32
    %c0_i32_1 = arith.constant 0 : i32
    return %c0_i32, %c0_i32_0 : i32, i32
  }
  func.func @transform_8(%arg0: i32) -> (i32, i32) {
    %c0_i32 = arith.constant 0 : i32
    %c0_i32_0 = arith.constant 0 : i32
    %c0_i32_1 = arith.constant 0 : i32
    return %c0_i32, %c0_i32_0 : i32, i32
  }
  func.func @transform_9(%arg0: i32) -> (i32, i32) {
    %c0_i32 = arith.constant 0 : i32
    %c0_i32_0 = arith.constant 0 : i32
    %c0_i32_1 = arith.constant 0 : i32
    return %c0_i32, %c0_i32_0 : i32, i32
  }
  func.func @transform_10(%arg0: i32) -> (i32, i32) {
    %c0_i32 = arith.constant 0 : i32
    %c0_i32_0 = arith.constant 0 : i32
    return %c0_i32, %arg0 : i32, i32
  }
}

</mosaic_0001>

<bundles_post_ra>
// kernel: tpu_custom_call.1
= control target key start
LH: loop header
LB: loop body
LE: loop exit
PB: predicated region body
PF: predicated region fallthrough
CT: control target
= control target key end

     0   :  { %v657_v5 = vmov 0.0   ;;  %v658_v6 = vmov 0   ;;  %vm52_vm0 = vcmask 130048   ;;  %s846_s0 = inlined_call_operand.vmem [shape: f32[16,256], index: 0, kind: input, shape index: {}]   ;;  %s847_s1 = inlined_call_operand.vmem [shape: f32[16,256], index: 1, kind: input, shape index: {}]   ;;  %s848_s2 = inlined_call_operand.vmem [shape: s8[8,256], index: 2, kind: input, shape index: {}]   ;;  %s849_s3 = inlined_call_operand.vmem [shape: f32[32,16], index: 3, kind: input, shape index: {}]   ;;  %s850_s4 = inlined_call_operand.vmem [shape: f32[32,16], index: 4, kind: input, shape index: {}]   ;;  %s851_s5 = inlined_call_operand.vmem [shape: f32[32,1], index: 5, kind: input, shape index: {}]   ;;  %s852_s6 = inlined_call_operand.vmem [shape: f32[32,32], index: 6, kind: input, shape index: {}]   ;;  %s853_s7 = inlined_call_operand.vmem [shape: f32[32,1], index: 7, kind: input, shape index: {}]   ;;  %s854_s8 = inlined_call_operand.vmem [shape: f32[8,32], index: 8, kind: input, shape index: {}]   ;;  %s855_s9 = inlined_call_operand.vmem [shape: f32[8,1], index: 9, kind: input, shape index: {}]   ;;  %s856_s10 = inlined_call_operand.hbm [shape: f32[8,256], index: 10, kind: output, shape index: {}]  }
   0x1   :  { %v49_v0 = vld [vmem:[%s847_s1 + $0x8] sm:$0xff]  ;;  %v51_v1 = vld [vmem:[%s847_s1 + $0x18] sm:$0xff]  ;;  %v48_v2 = vld [vmem:[%s847_s1] sm:$0xff]  ;;  %129 = vmatprep.mubr.f32.mxu0 %v657_v5  ;;  %623 = vset.pattern.permute.xlu0 %v658_v6 }
   0x2   :  { %v588_v3 = vpack.c.bf16 %v51_v1, %v49_v0  ;;  %v50_v4 = vld [vmem:[%s847_s1 + $0x10] sm:$0xff]  ;;  %v41_v8 = vld [vmem:[%s846_s0 + $0x8] sm:$0xff]  ;;  %v43_v9 = vld [vmem:[%s846_s0 + $0x18] sm:$0xff]  ;;  %624 = vset.pattern.permute.xlu1 %v658_v6  ;;  %400 = vmatprep.mubr.f32.mxu1 %v657_v5 }
   0x3   :  { %v590_v7 = vpack.c.bf16 %v50_v4, %v48_v2  ;;  %v40_v10 = vld [vmem:[%s846_s0] sm:$0xff]  ;;  %v592_v11 = vpack.c.bf16 %v43_v9, %v41_v8  ;;  %v42_v12 = vld [vmem:[%s846_s0 + $0x10] sm:$0xff]  ;;  %v256_v17 = vld [vmem:[%s851_s5 + $0x8] sm:$0xff] }
   0x4   :  { %589 = vmatprep.subr.bf16.mxu0 %v588_v3  ;;  %v44_v13 = vld [vmem:[%s850_s4] sm:$0xff]  ;;  %v594_v14 = vpack.c.bf16 %v42_v12, %v40_v10  ;;  %v257_v16 = vld [vmem:[%s851_s5 + $0x10] sm:$0xff]  ;;  %v45_v18 = vld [vmem:[%s850_s4 + $0x8] sm:$0xff] }
   0x5   :  { %591 = vmatpush1.bf16.msra.mxu0 %v590_v7  ;;  %v255_v15 = vld [vmem:[%s851_s5] sm:$0xff]  ;;  %271 = vperm.xlu1 %624, %v257_v16   ;;  %v258_v19 = vld [vmem:[%s851_s5 + $0x18] sm:$0xff] }
   0x6   :  { %593 = vmatprep.subr.bf16.mxu0 %v592_v11  ;;  %261 = vperm.xlu0 %623, %v255_v15  }
   0x8   :  { %575 = vmatmul.mubr.msk.f32.vlgmr.msra.gmra.mrb[0].mxu0 %vm52_vm0, %v44_v13 }
   0x9   :  { %135 = vmatprep.mubr.f32.mxu0 %v657_v5  ;;  %595 = vmatpush1.bf16.msra.mxu0 %v594_v14 }
   0xa   :  { %15 = vsyncpa [#allocation3], 0  ;;  %266 = vperm.xlu0 %623, %v256_v17   ;;  %v299_v20 = vld [vmem:[%s853_s7] sm:$0xff]  ;;  %276 = vperm.xlu1 %624, %v258_v19   ;;  %v46_v21 = vld [vmem:[%s850_s4 + $0x10] sm:$0xff]  ;;  %vm323_vm1 = vcmask 261120  }
   0xb   :  { %v300_v22 = vld [vmem:[%s853_s7 + $0x8] sm:$0xff]  ;;  %v301_v23 = vld [vmem:[%s853_s7 + $0x10] sm:$0xff]  ;;  %v47_v24 = vld [vmem:[%s850_s4 + $0x18] sm:$0xff] }
   0xc   :  { %576 = vmatmul.mubr.msk.f32.gmra.mrb[2].mxu0 %vm52_vm0, %v45_v18  ;;  %v302_v25 = vld [vmem:[%s853_s7 + $0x18] sm:$0xff]  ;;  %v434_v26 = vld [vmem:[%s855_s9] sm:$0xff]  ;;  %v37_v28 = vld [vmem:[%s849_s3 + $0x8] sm:$0xff] }
   0xd   :  { %141 = vmatprep.mubr.f32.mxu0 %v657_v5  ;;  %v36_v27 = vld [vmem:[%s849_s3] sm:$0xff]  ;;  %v38_v29 = vld [vmem:[%s849_s3 + $0x10] sm:$0xff]  ;;  %v39_v30 = vld [vmem:[%s849_s3 + $0x18] sm:$0xff] }
   0xe   :  { %305 = vperm.xlu0 %623, %v299_v20   ;;  %310 = vperm.xlu1 %624, %v300_v22   ;;  %v295_v63 = vld [vmem:[%s852_s6] sm:$0xff]  ;;  %v296_v0 = vld [vmem:[%s852_s6 + $0x8] sm:$0xff]  ;;  %v297_v1 = vld [vmem:[%s852_s6 + $0x10] sm:$0xff] }
   0xf   :  { %v298_v2 = vld [vmem:[%s852_s6 + $0x18] sm:$0xff] }
  0x10   :  { %577 = vmatmul.mubr.msk.f32.gmra.mrb[4].mxu0 %vm52_vm0, %v46_v21 }
  0x11   :  { %147 = vmatprep.mubr.f32.mxu0 %v657_v5 }
  0x12   :  { %315 = vperm.xlu0 %623, %v301_v23   ;;  %320 = vperm.xlu1 %624, %v302_v25  }
  0x14   :  { %578 = vmatmul.mubr.msk.f32.gmra.mrb[6].mxu0 %vm52_vm0, %v47_v24 }
  0x15   :  { %230 = vmatprep.mubr.f32.mxu0 %v657_v5 }
  0x16   :  { %437 = vperm.xlu0 %623, %v434_v26  }
  0x18   :  { %579 = vmatmul.mubr.msk.f32.vlgmr.msra.gmra.mrb[0].mxu0 %vm52_vm0, %v36_v27 }
  0x19   :  { %236 = vmatprep.mubr.f32.mxu0 %v657_v5 }
  0x1c   :  { %580 = vmatmul.mubr.msk.f32.gmra.mrb[2].mxu0 %vm52_vm0, %v37_v28 }
  0x1d   :  { %242 = vmatprep.mubr.f32.mxu0 %v657_v5 }
  0x20   :  { %581 = vmatmul.mubr.msk.f32.gmra.mrb[4].mxu0 %vm52_vm0, %v38_v29 }
  0x21   :  { %248 = vmatprep.mubr.f32.mxu0 %v657_v5 }
  0x24   :  { %582 = vmatmul.mubr.msk.f32.gmra.mrb[6].mxu0 %vm52_vm0, %v39_v30 }
  0x84   :  { %v272_v40 = vpop.permute.xlu1 %271 }
  0x85   :  { %v262_v31 = vpop.permute.xlu0 %261 }
  0x89   :  { %v267_v35 = vpop.permute.xlu0 %266  ;;  %v277_v51 = vpop.permute.xlu1 %276 }
  0x8d   :  { %v306_v6 = vpop.permute.xlu0 %305  ;;  %v311_v8 = vpop.permute.xlu1 %310 }
  0x91   :  { %v316_v21 = vpop.permute.xlu0 %315  ;;  %v321_v23 = vpop.permute.xlu1 %320 }
  0xeb   :  { %v232_v32 = vpop.f32.mrb[0].mxu0 }
  0xec   :  { %v234_v33 = vpop.f32.mrb[1].mxu0  ;;  %v279_v34 = vadd.f32 %v262_v31, %v232_v32 }
  0xed   :  { %v280_v36 = vadd.f32 %v262_v31, %v234_v33 }
  0xee   :  { %v287_v42 = vmax.f32 %v279_v34, 0.0 }
  0xef   :  { %v238_v37 = vpop.f32.mrb[2].mxu0  ;;  %v288_v44 = vmax.f32 %v280_v36, 0.0  ;;  %v514_v36 = vld [vmem:[%s848_s2] sm:$0xf]  ;;  %s659_s2 = smov [#allocation2]  }
  0xf0   :  { %v281_v38 = vadd.f32 %v267_v35, %v238_v37  ;;  %v240_v39 = vpop.f32.mrb[3].mxu0  ;;  %v515_v37 = vunpack.c.0.s8 %v514_v36 }
  0xf1   :  { %v282_v41 = vadd.f32 %v267_v35, %v240_v39  ;;  %v433_v35 = vld [vmem:[%s854_s8] sm:$0xff]  ;;  %v438_v39 = vpop.permute.xlu0 %437  ;;  %s567_s8 = sshll.u32 %s659_s2, 4  ;;  %s568_s8 = int_to_ptr.vmem [resolvable:$true] %s567_s8 }
  0xf2   :  { %v289_v43 = vmax.f32 %v281_v38, 0.0  ;;  %v516_v38 = vunpack.c.1.s8 %v514_v36  ;;  %vm517_vm2 = vcmp.ne.s32.totalorder %v515_v37, 0  ;;  %s633_s5 = scalar_lea.vmem %s568_s8, 256  ;;  %p638_p1 = scmp.lt.s32.totalorder %s568_s8, %s568_s8 }
  0xf3   :  { %v290_v45 = vmax.f32 %v282_v41, 0.0  ;;  %v244_v46 = vpop.f32.mrb[4].mxu0  ;;  %p634_p0 = scmp.ne.s32.totalorder %s568_s8, %s633_s5  ;;  %p639_p2 = scmp.lt.s32.totalorder %s633_s5, %s633_s5 }
  0xf4   :  { %v246_v47 = vpop.f32.mrb[5].mxu0  ;;  %v598_v48 = vpack.c.bf16 %v289_v43, %v287_v42  ;;  %v283_v50 = vadd.f32 %v272_v40, %v244_v46  ;;  %vm518_vm3 = vcmp.ne.s32.totalorder %v516_v38, 0 }
  0xf5   :  { %v596_v49 = vpack.c.bf16 %v290_v45, %v288_v44  ;;  %v284_v52 = vadd.f32 %v272_v40, %v246_v47  ;;  %p640_p3 = por %p639_p2, %p638_p1 }
  0xf6   :  { %v291_v57 = vmax.f32 %v283_v50, 0.0 }
  0xf7   :  { %v250_v53 = vpop.f32.mrb[6].mxu0  ;;  %597 = vmatprep.subr.bf16.mxu1 %v596_v49  ;;  %v292_v59 = vmax.f32 %v284_v52, 0.0  ;;  %p641_p4 = pnand %p640_p3, %p634_p0 }
  0xf8   :  { %v285_v54 = vadd.f32 %v277_v51, %v250_v53  ;;  %v252_v55 = vpop.f32.mrb[7].mxu0  ;;  %599 = vmatpush1.bf16.msra.mxu1 %v598_v48 }
  0xf9   :  { %v286_v56 = vadd.f32 %v277_v51, %v252_v55 }
  0xfa   :  { %v293_v58 = vmax.f32 %v285_v54, 0.0 }
  0xfb   :  { %v294_v60 = vmax.f32 %v286_v56, 0.0 }
  0xfc   :  { %v602_v61 = vpack.c.bf16 %v293_v58, %v291_v57 }
  0xfd   :  { %v600_v62 = vpack.c.bf16 %v294_v60, %v292_v59 }
  0xff   :  { %601 = vmatprep.subr.bf16.mxu1 %v600_v62 }
 0x100   :  { %603 = vmatpush1.bf16.msra.mxu1 %v602_v61 }
 0x103   :  { %583 = vmatmul.mubr.msk.f32.vlgmr.msra.gmra.mrb[0].mxu1 %vm323_vm1, %v295_v63 }
 0x104   :  { %406 = vmatprep.mubr.f32.mxu1 %v657_v5 }
 0x107   :  { %584 = vmatmul.mubr.msk.f32.gmra.mrb[2].mxu1 %vm323_vm1, %v296_v0 }
 0x108   :  { %412 = vmatprep.mubr.f32.mxu1 %v657_v5 }
 0x10b   :  { %585 = vmatmul.mubr.msk.f32.gmra.mrb[4].mxu1 %vm323_vm1, %v297_v1 }
 0x10c   :  { %418 = vmatprep.mubr.f32.mxu1 %v657_v5 }
 0x10f   :  { %586 = vmatmul.mubr.msk.f32.gmra.mrb[6].mxu1 %vm323_vm1, %v298_v2 }
 0x110   :  { %507 = vmatprep.mubr.f32.mxu1 %v657_v5 }
 0x1d6   :  { %v402_v3 = vpop.f32.mrb[0].mxu1 }
 0x1d7   :  { %v404_v4 = vpop.f32.mrb[1].mxu1  ;;  %v403_v7 = vadd.f32 %v402_v3, %v306_v6 }
 0x1d8   :  { %v405_v9 = vadd.f32 %v404_v4, %v306_v6 }
 0x1d9   :  { %v425_v14 = vmax.f32 %v403_v7, 0.0 }
 0x1da   :  { %v408_v10 = vpop.f32.mrb[2].mxu1  ;;  %v426_v16 = vmax.f32 %v405_v9, 0.0 }
 0x1db   :  { %v409_v11 = vadd.f32 %v408_v10, %v311_v8  ;;  %v410_v12 = vpop.f32.mrb[3].mxu1 }
 0x1dc   :  { %v411_v13 = vadd.f32 %v410_v12, %v311_v8 }
 0x1dd   :  { %v427_v15 = vmax.f32 %v409_v11, 0.0 }
 0x1de   :  { %v428_v17 = vmax.f32 %v411_v13, 0.0  ;;  %v414_v18 = vpop.f32.mrb[4].mxu1 }
 0x1df   :  { %v606_v19 = vpack.c.bf16 %v427_v15, %v425_v14  ;;  %v416_v20 = vpop.f32.mrb[5].mxu1  ;;  %v415_v5 = vadd.f32 %v414_v18, %v316_v21 }
 0x1e0   :  { %v604_v22 = vpack.c.bf16 %v428_v17, %v426_v16  ;;  %v417_v24 = vadd.f32 %v416_v20, %v316_v21 }
 0x1e1   :  { %v429_v29 = vmax.f32 %v415_v5, 0.0 }
 0x1e2   :  { %v420_v25 = vpop.f32.mrb[6].mxu1  ;;  %605 = vmatprep.subr.bf16.mxu1 %v604_v22  ;;  %v430_v31 = vmax.f32 %v417_v24, 0.0 }
 0x1e3   :  { %v421_v26 = vadd.f32 %v420_v25, %v321_v23  ;;  %v422_v27 = vpop.f32.mrb[7].mxu1  ;;  %607 = vmatpush1.bf16.msra.mxu1 %v606_v19 }
 0x1e4   :  { %v423_v28 = vadd.f32 %v422_v27, %v321_v23 }
 0x1e5   :  { %v431_v30 = vmax.f32 %v421_v26, 0.0 }
 0x1e6   :  { %v432_v32 = vmax.f32 %v423_v28, 0.0 }
 0x1e7   :  { %v610_v33 = vpack.c.bf16 %v431_v30, %v429_v29 }
 0x1e8   :  { %v608_v34 = vpack.c.bf16 %v432_v32, %v430_v31 }
 0x1ea   :  { %609 = vmatprep.subr.bf16.mxu1 %v608_v34 }
 0x1eb   :  { %611 = vmatpush1.bf16.msra.mxu1 %v610_v33 }
 0x1ee   :  { %587 = vmatmul.mubr.msk.f32.vlgmr.msra.gmra.mrb[8].mxu1 %vm323_vm1, %v433_v35 }
 0x2c1   :  { %v509_v40 = vpop.f32.mrb[8].mxu1 }
 0x2c2   :  { %v510_v41 = vadd.f32 %v509_v40, %v438_v39  ;;  %v511_v42 = vpop.f32.mrb[9].mxu1 }
 0x2c3   :  { %v512_v43 = vadd.f32 %v511_v42, %v438_v39 }
 0x2c4   :  { %v519_v44 = vsel %vm517_vm2, %v510_v41, -1e+12 }
 0x2c5   :  { %v521_v45 = vrot.slane %v519_v44, 4  ;;  %v520_v46 = vsel %vm518_vm3, %v512_v43, -1e+12 }
 0x2c6   :  { %v527_v47 = vrot.slane %v520_v46, 4 }
 0x2c7   :  { %v522_v48 = vmax.f32 %v519_v44, %v521_v45 }
 0x2c8   :  { %v528_v49 = vmax.f32 %v520_v46, %v527_v47 }
 0x2c9   :  { %v523_v50 = vrot.slane %v522_v48, 2 }
 0x2ca   :  { %v529_v51 = vrot.slane %v528_v49, 2 }
 0x2cb   :  { %v524_v52 = vmax.f32 %v522_v48, %v523_v50 }
 0x2cc   :  { %v530_v53 = vmax.f32 %v528_v49, %v529_v51 }
 0x2cd   :  { %v525_v54 = vrot.slane %v524_v52, 1 }
 0x2ce   :  { %v531_v55 = vrot.slane %v530_v53, 1 }
 0x2cf   :  { %v526_v56 = vmax.f32 %v524_v52, %v525_v54 }
 0x2d0   :  { %v532_v57 = vmax.f32 %v530_v53, %v531_v55 }
 0x2d1   :  { %v533_v58 = vsub.f32 %v519_v44, %v526_v56 }
 0x2d2   :  { %v534_v59 = vsub.f32 %v520_v46, %v532_v57 }
 0x2d3   :  { %v535_v60 = vmul.f32 1.442695, %v533_v58 }
 0x2d4   :  { %v537_v61 = vmul.f32 1.442695, %v534_v59 }
 0x2d5   :  { %625 = vpow2.f32 %v535_v60 }
 0x2d6   :  { %627 = vpow2.f32 %v537_v61 }
 0x2df   :  { %v626_v62 = vpop.eup %625 }
 0x2e0   :  { %v628_v63 = vpop.eup %627  ;;  %v539_v0 = vrot.slane %v626_v62, 4 }
 0x2e1   :  { %v545_v1 = vrot.slane %v628_v63, 4 }
 0x2e2   :  { %v540_v2 = vadd.f32 %v626_v62, %v539_v0 }
 0x2e3   :  { %v546_v3 = vadd.f32 %v628_v63, %v545_v1 }
 0x2e4   :  { %v541_v4 = vrot.slane %v540_v2, 2 }
 0x2e5   :  { %v547_v6 = vrot.slane %v546_v3, 2 }
 0x2e6   :  { %v542_v7 = vadd.f32 %v541_v4, %v540_v2 }
 0x2e7   :  { %v548_v8 = vadd.f32 %v547_v6, %v546_v3 }
 0x2e8   :  { %v543_v9 = vrot.slane %v542_v7, 1 }
 0x2e9   :  { %v549_v10 = vrot.slane %v548_v8, 1 }
 0x2ea   :  { %v544_v11 = vadd.f32 %v543_v9, %v542_v7 }
 0x2eb   :  { %v550_v12 = vadd.f32 %v549_v10, %v548_v8 }
 0x2ec   :  { %629 = vlog2.f32 %v544_v11 }
 0x2ed   :  { %631 = vlog2.f32 %v550_v12 }
 0x2f6   :  { %v630_v13 = vpop.eup %629 }
 0x2f7   :  { %v632_v14 = vpop.eup %631  ;;  %v552_v15 = vmul.f32 0.6931472, %v630_v13 }
 0x2f8   :  { %v554_v16 = vmul.f32 0.6931472, %v632_v14 }
 0x2f9   :  { %v555_v17 = vadd.f32 %v552_v15, %v526_v56 }
 0x2fa   :  { %v556_v18 = vadd.f32 %v554_v16, %v532_v57 }
 0x2fb   :  { %v557_v19 = vsub.f32 %v519_v44, %v555_v17 }
 0x2fc   :  { %v558_v20 = vsub.f32 %v520_v46, %v556_v18 }
 0x2fd   :  { %559 = vst [vmem:[#allocation2] sm:$0xff] %v557_v19 }
 0x2fe   :  { %560 = vst [vmem:[#allocation2 + $0x8] sm:$0xff] %v558_v20 }
 0x2ff   :  { %644 = shalt.err (!%p641_p4)
}
 0x300   :  { %s645_s1 = scalar_lea.hbm %s856_s10, 256 }
 0x301   :  { %p646_p5 = scmp.ne.s32.totalorder %s856_s10, %s645_s1  ;;  %p649_p6 = scmp.lt.u32.totalorder %s645_s1, %s856_s10 }
 0x303   :  { %p651_p7 = pnand %p649_p6, %p646_p5 }
 0x305   :  { %654 = shalt.err (!%p651_p7)
}
 0x306   :  { %570 = dma.vmem_to_hbm [thread:$0]  %s568_s8, 256, %s856_s10, [#allocation3]  }
 0x307   :  { %655 = dma.done.wait [#allocation3], 256  }
 0x308   :  { %656 = vsyncadd [#allocation3], 4294967040 }
 0x309   :  { %574 = vsyncpa [#allocation3], 1 }

</bundles_post_ra>
